<compile_context>
chip_gen: v5e
topology: v5e:2x2
jax: 0.10.0
libtpu: 0.0.40
codegen_flags: <defaults>
</compile_context>

<pallas_src>
import jax
import jax.numpy as jnp
import numpy as np
from jax import lax
from jax.experimental import pallas as pl
from jax.experimental.pallas import tpu as pltpu


def _round_up(x, m):
    return (x + m - 1) // m * m


def _pick_row_tile(n, target=512):
    """Largest multiple of 8 that divides n and is <= target (n is a multiple of 8)."""
    d = min(target, n)
    d -= d % 8
    while d >= 8:
        if n % d == 0:
            return d
        d -= 8
    return n


def _vmem_limit(need_bytes):
    """Scoped-VMEM request from real residency + headroom, capped by physical VMEM."""
    cap = 64 << 20
    try:
        cap = int(getattr(pltpu.get_tpu_info(), "vmem_capacity_bytes", cap))
    except Exception:
        pass
    want = max(int(need_bytes * 1.3) + (8 << 20), 16 << 20)
    return int(min(want, int(cap * 0.7)))


# --------------------- kernel 1: token2map + depthwise 3x3 ------------------ #
def _make_token2map_conv_kernel(H, W, Cp, HWp, row_strip=8):
    HW = H * W

    def kernel(a_ref, x_ref, w_ref, b_ref, o_ref, acc_ref, shf0, shf1, shf2):
        k = pl.program_id(1)

        # token2map partial product for this token tile: (HW, TN) @ (TN, Cp) -> f32.
        part = jnp.dot(a_ref[...], x_ref[...], preferred_element_type=jnp.float32)

        @pl.when(k == 0)
        def _():
            acc_ref[...] = part                      # overwrite: no zero-fill pass

        @pl.when(k > 0)
        def _():
            acc_ref[...] = acc_ref[...] + part

        # Finalize once per batch: depthwise 3x3 conv (stride 1, pad 1) + bias.
        @pl.when(k == pl.num_programs(1) - 1)
        def _():
            xmap = acc_ref[...].reshape(H, W, Cp)

            # Stage the map and its two W-shifted copies with a 1-row H halo so the
            # 9-tap strip loop below only slices along the leading (cheap) H axis.
            zrow = jnp.zeros((1, W, Cp), jnp.float32)
            for s_ref in (shf0, shf1, shf2):
                s_ref[0:1] = zrow                     # top halo row
                s_ref[H + 1:H + 2] = zrow             # bottom halo row
            shf1[1:H + 1] = xmap                      # center (w)
            if W > 1:
                zcol = jnp.zeros((H, 1, Cp), jnp.float32)
                shf0[1:H + 1, 0:1, :] = zcol          # left-neighbor map (w-1)
                shf0[1:H + 1, 1:W, :] = xmap[:, 0:W - 1, :]
                shf2[1:H + 1, W - 1:W, :] = zcol      # right-neighbor map (w+1)
                shf2[1:H + 1, 0:W - 1, :] = xmap[:, 1:W, :]
            else:
                zmid = jnp.zeros((H, W, Cp), jnp.float32)
                shf0[1:H + 1] = zmid
                shf2[1:H + 1] = zmid

            wgt = w_ref[...]                          # (9, Cp), loaded once
            taps = [wgt[t:t + 1, :].reshape(1, 1, Cp) for t in range(9)]
            bias = b_ref[...].reshape(1, 1, Cp)
            bands = (shf0, shf1, shf2)                # indexed by kj

            n_strips = (H + row_strip - 1) // row_strip
            for s in range(n_strips):
                r0 = s * row_strip
                rs = min(row_strip, H - r0)
                # conv starts from the first tap product; bias folded in at the end.
                conv = bands[0][r0:r0 + rs] * taps[0]
                for t in range(1, 9):
                    ki, kj = t // 3, t % 3
                    conv = conv + bands[kj][r0 + ki:r0 + ki + rs] * taps[t]
                conv = conv + bias
                o_ref[r0 * W:(r0 + rs) * W, :] = (
                    conv.reshape(rs * W, Cp).astype(o_ref.dtype))

            if HWp > HW:                              # zero the padded pixel rows
                o_ref[HW:HWp, :] = jnp.zeros((HWp - HW, Cp), o_ref.dtype)

    return kernel


# ------------------- kernel 2: map2token + 1x1 depthwise skip --------------- #
def _map2token_skip_kernel(m_ref, c_ref, x_ref, s_ref, o_ref):
    # (TM, HWp) @ (HWp, Cp) with the conv map fully VMEM-resident per batch.
    acc = jnp.dot(m_ref[...], c_ref[...], preferred_element_type=jnp.float32)
    # dwconv_skip: Conv1d(dim, dim, 1, groups=dim) == per-channel scale of x.
    acc = acc + x_ref[...].astype(jnp.float32) * s_ref[...]
    o_ref[...] = acc.astype(o_ref.dtype)


# --------------------------- glue (plain JAX) -------------------------------- #
def _build_matrices(loc_orig, idx_agg, agg_weight, H, W, N):
    """Dense equivalents of the torch.sparse matrices in token2map / map2token."""
    B, N0, _ = loc_orig.shape
    HW = H * W

    loc = jnp.clip(loc_orig, -1.0, 1.0) * 0.5 + 0.5
    gx = jnp.clip(jnp.round(loc[..., 0] * W - 0.5), 0, W - 1).astype(jnp.int32)
    gy = jnp.clip(jnp.round(loc[..., 1] * H - 0.5), 0, H - 1).astype(jnp.int32)
    idx_hw = gx + gy * W                                       # (B, N0)
    b_ids = jnp.broadcast_to(jnp.arange(B)[:, None], (B, N0))

    # token2map matrix A: (B, HW, N), row-normalized with +1e-6 (as in torch).
    A = jnp.zeros((B, HW, N), jnp.float32).at[b_ids, idx_hw, idx_agg].add(1.0)
    A = A / (A.sum(-1, keepdims=True) + 1e-6)

    # map2token matrix M: (B, N, HW), agg_weight-weighted, row-normalized.
    M = jnp.zeros((B, N, HW), jnp.float32).at[b_ids, idx_agg, idx_hw].add(
        agg_weight[..., 0].astype(jnp.float32))
    M = M / (M.sum(-1, keepdims=True) + 1e-6)
    return A, M


def my_dwconv(x, loc_orig, idx_agg, agg_weight, H, W, w_conv, b_conv, w_skip):
    B, N, C = x.shape
    HW = H * W

    Cp = _round_up(C, 128)                    # lane-dense channel padding
    TN = min(512, _round_up(N, 128))          # token contraction tile (kernel 1)
    Np = _round_up(N, TN)                     # padded token count
    KN = Np // TN
    HWp = _round_up(HW, 128)                  # lane-dense padded pixel count
    TM = _pick_row_tile(Np, 512)              # output row tile (kernel 2)
    NI = Np // TM

    # Dense scatter matrices (bf16: they dominate HBM / VMEM traffic), padded.
    A, M = _build_matrices(loc_orig, idx_agg, agg_weight, H, W, N)
    A = jnp.pad(A, ((0, 0), (0, 0), (0, Np - N))).astype(jnp.bfloat16)
    M = jnp.pad(M, ((0, 0), (0, Np - N), (0, HWp - HW))).astype(jnp.bfloat16)
    # Single bf16 copy of x feeds both the matmul path and the skip epilogue.
    x_bf16 = jnp.pad(x, ((0, 0), (0, Np - N), (0, Cp - C))).astype(jnp.bfloat16)

    # torch Conv2d depthwise weight (C,1,3,3) -> (9, Cp), tap index t = 3*ki + kj.
    w9 = jnp.pad(jnp.transpose(w_conv[:, 0].reshape(C, 9)).astype(jnp.float32),
                 ((0, 0), (0, Cp - C)))
    bias = jnp.pad(b_conv.reshape(1, C).astype(jnp.float32), ((0, 0), (0, Cp - C)))
    skip = jnp.pad(w_skip.reshape(1, C).astype(jnp.float32), ((0, 0), (0, Cp - C)))

    # ---- pallas_call 1: token2map (tiled over tokens) + depthwise 3x3 conv ----
    # Residency: A & x double-buffered, output revisited, scratch single-buffered,
    # plus finalize value temporaries (~2 map copies).
    k1_need = (2 * HW * TN * 2 + 2 * TN * Cp * 2 + 2 * HWp * Cp * 2
               + HW * Cp * 4 + 3 * (H + 2) * W * Cp * 4
               + 2 * H * W * Cp * 4 + 32 * Cp * 4)
    conv_map = pl.pallas_call(
        _make_token2map_conv_kernel(H, W, Cp, HWp),
        out_shape=jax.ShapeDtypeStruct((B, HWp, Cp), jnp.bfloat16),
        grid_spec=pltpu.PrefetchScalarGridSpec(
            num_scalar_prefetch=0,
            grid=(B, KN),
            in_specs=[
                pl.BlockSpec((None, HW, TN), lambda b, k: (b, 0, k)),   # A
                pl.BlockSpec((None, TN, Cp), lambda b, k: (b, k, 0)),   # x (bf16)
                pl.BlockSpec((9, Cp), lambda b, k: (0, 0)),             # dw conv weight
                pl.BlockSpec((1, Cp), lambda b, k: (0, 0)),             # dw conv bias
            ],
            out_specs=pl.BlockSpec((None, HWp, Cp), lambda b, k: (b, 0, 0)),
            scratch_shapes=[
                pltpu.VMEM((HW, Cp), jnp.float32),           # x_map accumulator
                pltpu.VMEM((H + 2, W, Cp), jnp.float32),     # w-1 shifted map (+halo)
                pltpu.VMEM((H + 2, W, Cp), jnp.float32),     # center map (+halo)
                pltpu.VMEM((H + 2, W, Cp), jnp.float32),     # w+1 shifted map (+halo)
            ],
        ),
        compiler_params=pltpu.CompilerParams(
            dimension_semantics=("parallel", "arbitrary"),
            vmem_limit_bytes=_vmem_limit(k1_need),
        ),
    )(A, x_bf16, w9, bias)

    # ---- pallas_call 2: map2token (row-tiled, parallel) + depthwise 1x1 skip ----
    k2_need = (2 * TM * HWp * 2 + 2 * HWp * Cp * 2 + 2 * TM * Cp * 2
               + 2 * TM * Cp * 4 + 16 * Cp * 4)
    out = pl.pallas_call(
        _map2token_skip_kernel,
        out_shape=jax.ShapeDtypeStruct((B, Np, Cp), jnp.float32),
        grid_spec=pltpu.PrefetchScalarGridSpec(
            num_scalar_prefetch=0,
            grid=(B, NI),
            in_specs=[
                pl.BlockSpec((None, TM, HWp), lambda b, i: (b, i, 0)),  # M row strip
                pl.BlockSpec((None, HWp, Cp), lambda b, i: (b, 0, 0)),  # conv map (resident)
                pl.BlockSpec((None, TM, Cp), lambda b, i: (b, i, 0)),   # x (bf16, skip)
                pl.BlockSpec((1, Cp), lambda b, i: (0, 0)),             # skip weight
            ],
            out_specs=pl.BlockSpec((None, TM, Cp), lambda b, i: (b, i, 0)),
        ),
        compiler_params=pltpu.CompilerParams(
            dimension_semantics=("parallel", "parallel"),
            vmem_limit_bytes=_vmem_limit(k2_need),
        ),
    )(M, conv_map, x_bf16, skip)

    return out[:, :N, :C].astype(x.dtype)


# ------------------------ pure-JAX reference check --------------------------- #
def reference(x, loc_orig, idx_agg, agg_weight, H, W, w_conv, b_conv, w_skip):
    B, N, C = x.shape
    A, M = _build_matrices(loc_orig, idx_agg, agg_weight, H, W, N)
    xmap = jnp.einsum('bpn,bnc->bpc', A, x).reshape(B, H, W, C)
    wr = jnp.transpose(w_conv[:, 0], (1, 2, 0))[:, :, None, :]          # (3,3,1,C)
    conv = lax.conv_general_dilated(
        xmap, wr, window_strides=(1, 1), padding='SAME',
        dimension_numbers=('NHWC', 'HWIO', 'NHWC'),
        feature_group_count=C) + b_conv.reshape(1, 1, 1, C)
    conv = conv.reshape(B, H * W, C)
    return jnp.einsum('bnp,bpc->bnc', M, conv) + x * w_skip.reshape(1, 1, C)


if __name__ == "__main__":
    B, N, C, H, W, N0 = 2, 16, 8, 8, 8, 64

    key = jax.random.PRNGKey(0)
    ks = jax.random.split(key, 7)
    x = jax.random.normal(ks[0], (B, N, C), jnp.float32)
    loc_orig = jax.random.uniform(ks[1], (B, N0, 2), jnp.float32,
                                  minval=-1.0, maxval=1.0)
    idx_agg = jax.random.randint(ks[2], (B, N0), 0, N)
    agg_weight = jax.random.uniform(ks[3], (B, N0, 1), jnp.float32,
                                    minval=0.1, maxval=1.0)
    # Deterministic synthetic parameters (torch shapes: (C,1,3,3), (C,), (C,1,1)).
    w_conv = jax.random.normal(ks[4], (C, 1, 3, 3), jnp.float32) * 0.2
    b_conv = jax.random.normal(ks[5], (C,), jnp.float32) * 0.1
    w_skip = jax.random.normal(ks[6], (C, 1, 1), jnp.float32) * 0.2

    out = my_dwconv(x, loc_orig, idx_agg, agg_weight, H, W,
                    w_conv, b_conv, w_skip)
    out = jax.block_until_ready(out)

    ref = reference(x, loc_orig, idx_agg, agg_weight, H, W,
                    w_conv, b_conv, w_skip)
    assert out.shape == (B, N, C)
    # bf16 A / M / x on the matmul path + bf16 intermediate map -> widened tolerance.
    assert np.allclose(np.asarray(out), np.asarray(ref), rtol=2e-2, atol=2.5e-2), \
        "Pallas kernel does not match reference"
    print("KERNEL_OK")
</pallas_src>

<mosaic_0001>
module attributes {stable_mosaic.version = 11 : i64} {
  func.func @kernel(%arg0: i32, %arg1: i32, %arg2: memref<1x64x128xbf16, #tpu.memory_space<vmem>>, %arg3: memref<1x128x128xbf16, #tpu.memory_space<vmem>>, %arg4: memref<9x128xf32, #tpu.memory_space<vmem>>, %arg5: memref<1x128xf32, #tpu.memory_space<vmem>>, %arg6: memref<1x128x128xbf16, #tpu.memory_space<vmem>>, %arg7: memref<64x128xf32, #tpu.memory_space<vmem>>, %arg8: memref<10x8x128xf32, #tpu.memory_space<vmem>>, %arg9: memref<10x8x128xf32, #tpu.memory_space<vmem>>, %arg10: memref<10x8x128xf32, #tpu.memory_space<vmem>>) attributes {dimension_semantics = [#tpu.dimension_semantics<parallel>, #tpu.dimension_semantics<arbitrary>], iteration_bounds = array<i64: 2, 1>, scalar_prefetch = 0 : i64, scratch_operands = 4 : i64, tpu.core_type = #tpu.core_type<tc>, window_params = [{transform_indices = @transform_0, window_bounds = array<i64: 1, 64, 128>}, {transform_indices = @transform_1, window_bounds = array<i64: 1, 128, 128>}, {pipeline_mode = #tpu.pipeline_mode<synchronous>, transform_indices = @transform_2, window_bounds = array<i64: 9, 128>}, {pipeline_mode = #tpu.pipeline_mode<synchronous>, transform_indices = @transform_3, window_bounds = array<i64: 1, 128>}, {transform_indices = @transform_4, window_bounds = array<i64: 1, 128, 128>}]} {
    %c0 = arith.constant 0 : index
    %c0_0 = arith.constant 0 : index
    %c0_1 = arith.constant 0 : index
    %0 = vector.load %arg2[%c0, %c0_0, %c0_1] : memref<1x64x128xbf16, #tpu.memory_space<vmem>>, vector<1x64x128xbf16>
    %1 = vector.shape_cast %0 : vector<1x64x128xbf16> to vector<64x128xbf16>
    %c0_2 = arith.constant 0 : index
    %c0_3 = arith.constant 0 : index
    %c0_4 = arith.constant 0 : index
    %2 = vector.load %arg3[%c0_2, %c0_3, %c0_4] : memref<1x128x128xbf16, #tpu.memory_space<vmem>>, vector<1x128x128xbf16>
    %3 = vector.shape_cast %2 : vector<1x128x128xbf16> to vector<128x128xbf16>
    %cst = arith.constant dense<0.000000e+00> : vector<64x128xf32>
    %4 = tpu.matmul %1, %3, %cst {dimension_numbers = #tpu.dot_dimension_numbers<[1], [0], [0], [1], [0, 0, 1, 1], [], []>} : vector<64x128xbf16>, vector<128x128xbf16>, vector<64x128xf32> -> vector<64x128xf32>
    %c0_i32 = arith.constant 0 : i32
    %5 = arith.cmpi eq, %arg1, %c0_i32 : i32
    %6 = arith.extui %5 : i1 to i32
    %c0_i32_5 = arith.constant 0 : i32
    %7 = arith.cmpi ne, %6, %c0_i32_5 : i32
    scf.if %7 {
      %c0_10 = arith.constant 0 : index
      %c0_11 = arith.constant 0 : index
      %14 = vector.load %arg7[%c0_10, %c0_11] : memref<64x128xf32, #tpu.memory_space<vmem>>, vector<64x128xf32>
      tpu.vector_store %arg7[%c0_10, %c0_11], %4 {strides = array<i32>} : memref<64x128xf32, #tpu.memory_space<vmem>>, vector<64x128xf32>,
    } else {
    }
    %c0_i32_6 = arith.constant 0 : i32
    %8 = arith.cmpi sgt, %arg1, %c0_i32_6 : i32
    %9 = arith.extui %8 : i1 to i32
    %c0_i32_7 = arith.constant 0 : i32
    %10 = arith.cmpi ne, %9, %c0_i32_7 : i32
    scf.if %10 {
      %c0_10 = arith.constant 0 : index
      %c0_11 = arith.constant 0 : index
      %14 = vector.load %arg7[%c0_10, %c0_11] : memref<64x128xf32, #tpu.memory_space<vmem>>, vector<64x128xf32>
      %15 = arith.addf %14, %4 : vector<64x128xf32>
      %c0_12 = arith.constant 0 : index
      %c0_13 = arith.constant 0 : index
      %16 = vector.load %arg7[%c0_12, %c0_13] : memref<64x128xf32, #tpu.memory_space<vmem>>, vector<64x128xf32>
      tpu.vector_store %arg7[%c0_12, %c0_13], %15 {strides = array<i32>} : memref<64x128xf32, #tpu.memory_space<vmem>>, vector<64x128xf32>,
    } else {
    }
    %c0_i32_8 = arith.constant 0 : i32
    %11 = arith.cmpi eq, %arg1, %c0_i32_8 : i32
    %12 = arith.extui %11 : i1 to i32
    %c0_i32_9 = arith.constant 0 : i32
    %13 = arith.cmpi ne, %12, %c0_i32_9 : i32
    scf.if %13 {
      %c0_10 = arith.constant 0 : index
      %c0_11 = arith.constant 0 : index
      %14 = vector.load %arg7[%c0_10, %c0_11] : memref<64x128xf32, #tpu.memory_space<vmem>>, vector<64x128xf32>
      %15 = vector.shape_cast %14 : vector<64x128xf32> to vector<8x8x128xf32>
      %cst_12 = arith.constant 0.000000e+00 : f32
      %16 = vector.broadcast %cst_12 : f32 to vector<1x8x128xf32>
      %c0_13 = arith.constant 0 : index
      %c0_14 = arith.constant 0 : index
      %c0_15 = arith.constant 0 : index
      %17 = vector.load %arg8[%c0_13, %c0_14, %c0_15] : memref<10x8x128xf32, #tpu.memory_space<vmem>>, vector<1x8x128xf32>
      tpu.vector_store %arg8[%c0_13, %c0_14, %c0_15], %16 {strides = array<i32>} : memref<10x8x128xf32, #tpu.memory_space<vmem>>, vector<1x8x128xf32>,
      %c9 = arith.constant 9 : index
      %c0_16 = arith.constant 0 : index
      %c0_17 = arith.constant 0 : index
      %18 = vector.load %arg8[%c9, %c0_16, %c0_17] : memref<10x8x128xf32, #tpu.memory_space<vmem>>, vector<1x8x128xf32>
      tpu.vector_store %arg8[%c9, %c0_16, %c0_17], %16 {strides = array<i32>} : memref<10x8x128xf32, #tpu.memory_space<vmem>>, vector<1x8x128xf32>,
      %c0_18 = arith.constant 0 : index
      %c0_19 = arith.constant 0 : index
      %c0_20 = arith.constant 0 : index
      %19 = vector.load %arg9[%c0_18, %c0_19, %c0_20] : memref<10x8x128xf32, #tpu.memory_space<vmem>>, vector<1x8x128xf32>
      tpu.vector_store %arg9[%c0_18, %c0_19, %c0_20], %16 {strides = array<i32>} : memref<10x8x128xf32, #tpu.memory_space<vmem>>, vector<1x8x128xf32>,
      %c9_21 = arith.constant 9 : index
      %c0_22 = arith.constant 0 : index
      %c0_23 = arith.constant 0 : index
      %20 = vector.load %arg9[%c9_21, %c0_22, %c0_23] : memref<10x8x128xf32, #tpu.memory_space<vmem>>, vector<1x8x128xf32>
      tpu.vector_store %arg9[%c9_21, %c0_22, %c0_23], %16 {strides = array<i32>} : memref<10x8x128xf32, #tpu.memory_space<vmem>>, vector<1x8x128xf32>,
      %c0_24 = arith.constant 0 : index
      %c0_25 = arith.constant 0 : index
      %c0_26 = arith.constant 0 : index
      %21 = vector.load %arg10[%c0_24, %c0_25, %c0_26] : memref<10x8x128xf32, #tpu.memory_space<vmem>>, vector<1x8x128xf32>
      tpu.vector_store %arg10[%c0_24, %c0_25, %c0_26], %16 {strides = array<i32>} : memref<10x8x128xf32, #tpu.memory_space<vmem>>, vector<1x8x128xf32>,
      %c9_27 = arith.constant 9 : index
      %c0_28 = arith.constant 0 : index
      %c0_29 = arith.constant 0 : index
      %22 = vector.load %arg10[%c9_27, %c0_28, %c0_29] : memref<10x8x128xf32, #tpu.memory_space<vmem>>, vector<1x8x128xf32>
      tpu.vector_store %arg10[%c9_27, %c0_28, %c0_29], %16 {strides = array<i32>} : memref<10x8x128xf32, #tpu.memory_space<vmem>>, vector<1x8x128xf32>,
      %c1 = arith.constant 1 : index
      %c0_30 = arith.constant 0 : index
      %c0_31 = arith.constant 0 : index
      %23 = vector.load %arg9[%c1, %c0_30, %c0_31] : memref<10x8x128xf32, #tpu.memory_space<vmem>>, vector<8x8x128xf32>
      tpu.vector_store %arg9[%c1, %c0_30, %c0_31], %15 {strides = array<i32>} : memref<10x8x128xf32, #tpu.memory_space<vmem>>, vector<8x8x128xf32>,
      %cst_32 = arith.constant 0.000000e+00 : f32
      %24 = vector.broadcast %cst_32 : f32 to vector<8x1x128xf32>
      %c1_33 = arith.constant 1 : index
      %c0_34 = arith.constant 0 : index
      %c0_35 = arith.constant 0 : index
      %25 = vector.load %arg8[%c1_33, %c0_34, %c0_35] : memref<10x8x128xf32, #tpu.memory_space<vmem>>, vector<8x1x128xf32>
      tpu.vector_store %arg8[%c1_33, %c0_34, %c0_35], %24 {strides = array<i32>} : memref<10x8x128xf32, #tpu.memory_space<vmem>>, vector<8x1x128xf32>,
      %26 = vector.extract_strided_slice %15 {offsets = [0, 0, 0], sizes = [8, 7, 128], strides = [1, 1, 1]} : vector<8x8x128xf32> to vector<8x7x128xf32>
      %c1_36 = arith.constant 1 : index
      %c1_37 = arith.constant 1 : index
      %c0_38 = arith.constant 0 : index
      %27 = vector.load %arg8[%c1_36, %c1_37, %c0_38] : memref<10x8x128xf32, #tpu.memory_space<vmem>>, vector<8x7x128xf32>
      tpu.vector_store %arg8[%c1_36, %c1_37, %c0_38], %26 {strides = array<i32>} : memref<10x8x128xf32, #tpu.memory_space<vmem>>, vector<8x7x128xf32>,
      %c1_39 = arith.constant 1 : index
      %c7 = arith.constant 7 : index
      %c0_40 = arith.constant 0 : index
      %28 = vector.load %arg10[%c1_39, %c7, %c0_40] : memref<10x8x128xf32, #tpu.memory_space<vmem>>, vector<8x1x128xf32>
      tpu.vector_store %arg10[%c1_39, %c7, %c0_40], %24 {strides = array<i32>} : memref<10x8x128xf32, #tpu.memory_space<vmem>>, vector<8x1x128xf32>,
      %29 = vector.extract_strided_slice %15 {offsets = [0, 1, 0], sizes = [8, 7, 128], strides = [1, 1, 1]} : vector<8x8x128xf32> to vector<8x7x128xf32>
      %c1_41 = arith.constant 1 : index
      %c0_42 = arith.constant 0 : index
      %c0_43 = arith.constant 0 : index
      %30 = vector.load %arg10[%c1_41, %c0_42, %c0_43] : memref<10x8x128xf32, #tpu.memory_space<vmem>>, vector<8x7x128xf32>
      tpu.vector_store %arg10[%c1_41, %c0_42, %c0_43], %29 {strides = array<i32>} : memref<10x8x128xf32, #tpu.memory_space<vmem>>, vector<8x7x128xf32>,
      %c0_44 = arith.constant 0 : index
      %c0_45 = arith.constant 0 : index
      %31 = vector.load %arg4[%c0_44, %c0_45] : memref<9x128xf32, #tpu.memory_space<vmem>>, vector<9x128xf32>
      %32 = vector.extract_strided_slice %31 {offsets = [0, 0], sizes = [1, 128], strides = [1, 1]} : vector<9x128xf32> to vector<1x128xf32>
      %33 = vector.shape_cast %32 : vector<1x128xf32> to vector<1x1x128xf32>
      %34 = vector.extract_strided_slice %31 {offsets = [1, 0], sizes = [1, 128], strides = [1, 1]} : vector<9x128xf32> to vector<1x128xf32>
      %35 = vector.shape_cast %34 : vector<1x128xf32> to vector<1x1x128xf32>
      %36 = vector.extract_strided_slice %31 {offsets = [2, 0], sizes = [1, 128], strides = [1, 1]} : vector<9x128xf32> to vector<1x128xf32>
      %37 = vector.shape_cast %36 : vector<1x128xf32> to vector<1x1x128xf32>
      %38 = vector.extract_strided_slice %31 {offsets = [3, 0], sizes = [1, 128], strides = [1, 1]} : vector<9x128xf32> to vector<1x128xf32>
      %39 = vector.shape_cast %38 : vector<1x128xf32> to vector<1x1x128xf32>
      %40 = vector.extract_strided_slice %31 {offsets = [4, 0], sizes = [1, 128], strides = [1, 1]} : vector<9x128xf32> to vector<1x128xf32>
      %41 = vector.shape_cast %40 : vector<1x128xf32> to vector<1x1x128xf32>
      %42 = vector.extract_strided_slice %31 {offsets = [5, 0], sizes = [1, 128], strides = [1, 1]} : vector<9x128xf32> to vector<1x128xf32>
      %43 = vector.shape_cast %42 : vector<1x128xf32> to vector<1x1x128xf32>
      %44 = vector.extract_strided_slice %31 {offsets = [6, 0], sizes = [1, 128], strides = [1, 1]} : vector<9x128xf32> to vector<1x128xf32>
      %45 = vector.shape_cast %44 : vector<1x128xf32> to vector<1x1x128xf32>
      %46 = vector.extract_strided_slice %31 {offsets = [7, 0], sizes = [1, 128], strides = [1, 1]} : vector<9x128xf32> to vector<1x128xf32>
      %47 = vector.shape_cast %46 : vector<1x128xf32> to vector<1x1x128xf32>
      %48 = vector.extract_strided_slice %31 {offsets = [8, 0], sizes = [1, 128], strides = [1, 1]} : vector<9x128xf32> to vector<1x128xf32>
      %49 = vector.shape_cast %48 : vector<1x128xf32> to vector<1x1x128xf32>
      %c0_46 = arith.constant 0 : index
      %c0_47 = arith.constant 0 : index
      %50 = vector.load %arg5[%c0_46, %c0_47] : memref<1x128xf32, #tpu.memory_space<vmem>>, vector<1x128xf32>
      %51 = vector.shape_cast %50 : vector<1x128xf32> to vector<1x1x128xf32>
      %c0_48 = arith.constant 0 : index
      %c0_49 = arith.constant 0 : index
      %c0_50 = arith.constant 0 : index
      %52 = vector.load %arg8[%c0_48, %c0_49, %c0_50] : memref<10x8x128xf32, #tpu.memory_space<vmem>>, vector<8x8x128xf32>
      %53 = vector.broadcast %33 : vector<1x1x128xf32> to vector<8x8x128xf32>
      %54 = arith.mulf %52, %53 : vector<8x8x128xf32>
      %c0_51 = arith.constant 0 : index
      %c0_52 = arith.constant 0 : index
      %c0_53 = arith.constant 0 : index
      %55 = vector.load %arg9[%c0_51, %c0_52, %c0_53] : memref<10x8x128xf32, #tpu.memory_space<vmem>>, vector<8x8x128xf32>
      %56 = vector.broadcast %35 : vector<1x1x128xf32> to vector<8x8x128xf32>
      %57 = arith.mulf %55, %56 : vector<8x8x128xf32>
      %58 = arith.addf %54, %57 : vector<8x8x128xf32>
      %c0_54 = arith.constant 0 : index
      %c0_55 = arith.constant 0 : index
      %c0_56 = arith.constant 0 : index
      %59 = vector.load %arg10[%c0_54, %c0_55, %c0_56] : memref<10x8x128xf32, #tpu.memory_space<vmem>>, vector<8x8x128xf32>
      %60 = vector.broadcast %37 : vector<1x1x128xf32> to vector<8x8x128xf32>
      %61 = arith.mulf %59, %60 : vector<8x8x128xf32>
      %62 = arith.addf %58, %61 : vector<8x8x128xf32>
      %c1_57 = arith.constant 1 : index
      %c0_58 = arith.constant 0 : index
      %c0_59 = arith.constant 0 : index
      %63 = vector.load %arg8[%c1_57, %c0_58, %c0_59] : memref<10x8x128xf32, #tpu.memory_space<vmem>>, vector<8x8x128xf32>
      %64 = vector.broadcast %39 : vector<1x1x128xf32> to vector<8x8x128xf32>
      %65 = arith.mulf %63, %64 : vector<8x8x128xf32>
      %66 = arith.addf %62, %65 : vector<8x8x128xf32>
      %c1_60 = arith.constant 1 : index
      %c0_61 = arith.constant 0 : index
      %c0_62 = arith.constant 0 : index
      %67 = vector.load %arg9[%c1_60, %c0_61, %c0_62] : memref<10x8x128xf32, #tpu.memory_space<vmem>>, vector<8x8x128xf32>
      %68 = vector.broadcast %41 : vector<1x1x128xf32> to vector<8x8x128xf32>
      %69 = arith.mulf %67, %68 : vector<8x8x128xf32>
      %70 = arith.addf %66, %69 : vector<8x8x128xf32>
      %c1_63 = arith.constant 1 : index
      %c0_64 = arith.constant 0 : index
      %c0_65 = arith.constant 0 : index
      %71 = vector.load %arg10[%c1_63, %c0_64, %c0_65] : memref<10x8x128xf32, #tpu.memory_space<vmem>>, vector<8x8x128xf32>
      %72 = vector.broadcast %43 : vector<1x1x128xf32> to vector<8x8x128xf32>
      %73 = arith.mulf %71, %72 : vector<8x8x128xf32>
      %74 = arith.addf %70, %73 : vector<8x8x128xf32>
      %c2 = arith.constant 2 : index
      %c0_66 = arith.constant 0 : index
      %c0_67 = arith.constant 0 : index
      %75 = vector.load %arg8[%c2, %c0_66, %c0_67] : memref<10x8x128xf32, #tpu.memory_space<vmem>>, vector<8x8x128xf32>
      %76 = vector.broadcast %45 : vector<1x1x128xf32> to vector<8x8x128xf32>
      %77 = arith.mulf %75, %76 : vector<8x8x128xf32>
      %78 = arith.addf %74, %77 : vector<8x8x128xf32>
      %c2_68 = arith.constant 2 : index
      %c0_69 = arith.constant 0 : index
      %c0_70 = arith.constant 0 : index
      %79 = vector.load %arg9[%c2_68, %c0_69, %c0_70] : memref<10x8x128xf32, #tpu.memory_space<vmem>>, vector<8x8x128xf32>
      %80 = vector.broadcast %47 : vector<1x1x128xf32> to vector<8x8x128xf32>
      %81 = arith.mulf %79, %80 : vector<8x8x128xf32>
      %82 = arith.addf %78, %81 : vector<8x8x128xf32>
      %c2_71 = arith.constant 2 : index
      %c0_72 = arith.constant 0 : index
      %c0_73 = arith.constant 0 : index
      %83 = vector.load %arg10[%c2_71, %c0_72, %c0_73] : memref<10x8x128xf32, #tpu.memory_space<vmem>>, vector<8x8x128xf32>
      %84 = vector.broadcast %49 : vector<1x1x128xf32> to vector<8x8x128xf32>
      %85 = arith.mulf %83, %84 : vector<8x8x128xf32>
      %86 = arith.addf %82, %85 : vector<8x8x128xf32>
      %87 = vector.broadcast %51 : vector<1x1x128xf32> to vector<8x8x128xf32>
      %88 = arith.addf %86, %87 : vector<8x8x128xf32>
      %89 = vector.shape_cast %88 : vector<8x8x128xf32> to vector<64x128xf32>
      %90 = arith.truncf %89 : vector<64x128xf32> to vector<64x128xbf16>
      %c0_74 = arith.constant 0 : index
      %c0_75 = arith.constant 0 : index
      %c0_76 = arith.constant 0 : index
      %91 = vector.load %arg6[%c0_74, %c0_75, %c0_76] : memref<1x128x128xbf16, #tpu.memory_space<vmem>>, vector<1x64x128xbf16>
      %92 = vector.shape_cast %91 : vector<1x64x128xbf16> to vector<64x128xbf16>
      %93 = vector.shape_cast %90 : vector<64x128xbf16> to vector<1x64x128xbf16>
      tpu.vector_store %arg6[%c0_74, %c0_75, %c0_76], %93 {strides = array<i32>} : memref<1x128x128xbf16, #tpu.memory_space<vmem>>, vector<1x64x128xbf16>,
      %cst_77 = arith.constant 0.000000e+00 : bf16
      %94 = vector.broadcast %cst_77 : bf16 to vector<64x128xbf16>
      %c0_78 = arith.constant 0 : index
      %c64 = arith.constant 64 : index
      %c0_79 = arith.constant 0 : index
      %95 = vector.load %arg6[%c0_78, %c64, %c0_79] : memref<1x128x128xbf16, #tpu.memory_space<vmem>>, vector<1x64x128xbf16>
      %96 = vector.shape_cast %95 : vector<1x64x128xbf16> to vector<64x128xbf16>
      %97 = vector.shape_cast %94 : vector<64x128xbf16> to vector<1x64x128xbf16>
      tpu.vector_store %arg6[%c0_78, %c64, %c0_79], %97 {strides = array<i32>} : memref<1x128x128xbf16, #tpu.memory_space<vmem>>, vector<1x64x128xbf16>,
    } else {
    }
    return
  }
  func.func @transform_0(%arg0: i32, %arg1: i32) -> (i32, i32, i32) {
    %c0_i32 = arith.constant 0 : i32
    %c0_i32_0 = arith.constant 0 : i32
    return %arg0, %c0_i32, %arg1 : i32, i32, i32
  }
  func.func @transform_1(%arg0: i32, %arg1: i32) -> (i32, i32, i32) {
    %c0_i32 = arith.constant 0 : i32
    %c0_i32_0 = arith.constant 0 : i32
    return %arg0, %arg1, %c0_i32 : i32, i32, i32
  }
  func.func @transform_2(%arg0: i32, %arg1: i32) -> (i32, i32) {
    %c0_i32 = arith.constant 0 : i32
    %c0_i32_0 = arith.constant 0 : i32
    %c0_i32_1 = arith.constant 0 : i32
    return %c0_i32, %c0_i32_0 : i32, i32
  }
  func.func @transform_3(%arg0: i32, %arg1: i32) -> (i32, i32) {
    %c0_i32 = arith.constant 0 : i32
    %c0_i32_0 = arith.constant 0 : i32
    %c0_i32_1 = arith.constant 0 : i32
    return %c0_i32, %c0_i32_0 : i32, i32
  }
  func.func @transform_4(%arg0: i32, %arg1: i32) -> (i32, i32, i32) {
    %c0_i32 = arith.constant 0 : i32
    %c0_i32_0 = arith.constant 0 : i32
    %c0_i32_1 = arith.constant 0 : i32
    return %arg0, %c0_i32, %c0_i32_0 : i32, i32, i32
  }
}

</mosaic_0001>

<bundles_post_ra>
// kernel: tpu_custom_call.1
= control target key start
LH: loop header
LB: loop body
LE: loop exit
PB: predicated region body
PF: predicated region fallthrough
CT: control target
= control target key end

     0   :  { %s1728_s0 = inlined_call_operand.hbm [shape: bf16[2,64,128], index: 0, kind: input, shape index: {}]   ;;  %s1729_s1 = inlined_call_operand.hbm [shape: bf16[2,128,128], index: 1, kind: input, shape index: {}]   ;;  %s1730_s2 = inlined_call_operand.hbm [shape: f32[9,128], index: 2, kind: input, shape index: {}]   ;;  %s1731_s3 = inlined_call_operand.vmem [shape: f32[1,128], index: 3, kind: input, shape index: {}]   ;;  %s1732_s4 = inlined_call_operand.hbm [shape: bf16[2,128,128], index: 4, kind: output, shape index: {}]  }
   0x1   :  { %1734 = sst [smem:[#allocation19_spill]] %s1728_s0 }
   0x2   :  { %1735 = sst [smem:[#allocation20_spill]] %s1730_s2 }
   0x3   :  { %9 = vsyncpa [#allocation7], 0 }
   0x4   :  { %11 = vsyncpa [#allocation7 + $0x1], 0 }
   0x5   :  { %12 = vsyncpa [#allocation10], 0 }
   0x6   :  { %14 = vsyncpa [#allocation10 + $0x1], 0 }
   0x7   :  { %15 = vsyncpa [#allocation8], 0 }
   0x8   :  { %17 = vsyncpa [#allocation8 + $0x1], 0  ;;  %s1352_s15 = smov 0   ;;  %s1354_s16 = smov 0  }
   0x9   :  { %s1356_s17 = smov 0   ;;  %s1358_s18 = smov 0  }
   0xa   :  { %s1360_s19 = smov 0   ;;  %s1362_s20 = smov 0  }
   0xb LB: > { %s1383_s21 = sadd.s32 4294967295, %s1316_s20   ;;  %s918_s22 = sadd.s32 4294967294, %s1316_s20   ;;  %s1316_s20 = sphi %s1362_s20, %s23_s20   ;;  %s1312_s19 = sphi %s1360_s19, %s1752_s19   ;;  %s1308_s18 = sphi %s1358_s18, %s1751_s18   ;;  %s1304_s17 = sphi %s1356_s17, %s1750_s17   ;;  %s1300_s16 = sphi %s1354_s16, %s1749_s16   ;;  %s1296_s15 = sphi %s1352_s15, %s1748_s15  }
   0xc   : > { %p57_p0 = scmp.ne.s32.totalorder %s1300_s16, %s1296_s15  ;;  %p58_p1 = scmp.eq.s32.totalorder %s1383_s21, 0 }
   0xd   : > { %p151_p2 = scmp.eq.s32.totalorder %s1383_s21, 1  ;;  %p157_p3 = scmp.eq.s32.totalorder %s918_s22, 1 }
   0xe   : > { %p1392_p4 = por %p58_p1, %p57_p0  ;;  %p919_p5 = scmp.ge.s32.totalorder %s1316_s20, 1 }
   0xf   : > { %p1397_p6 = por %p157_p3, %p57_p0  ;;  %p164_p7 = scmp.lt.s32.totalorder %s1316_s20, 3 }
  0x10   : > { %s1738_s2 = sld [smem:[#allocation20_spill]]  ;;  %s1318_s29 = smov [#allocation11]  }
  0x11   : > { %p1405_p8 = pnand %p919_p5, %p164_p7  ;;  %s177_s30 = sshll.u32 %s1318_s29, 4  ;;  %s178_s30 = int_to_ptr.vmem [resolvable:$true] %s177_s30 }
  0x12   : > { %p921_p11 = scmp.ge.s32.totalorder %s1316_s20, 2  ;;  %s1319_s5 = smov 128  }
  0x13   : > { %p1058_p9 = pneg %p1405_p8  ;;  %s1320_s6 = smov 8  }
  0x14   : > { %s35_s7 = sadd.s32 1, %s1312_s19  ;;  %s44_s8 = sadd.s32 1, %s1304_s17 }
  0x15   : > { %p1059_p10 = pnand %p1058_p9, %p58_p1  ;;  %p37_p12 = scmp.ge.s32.totalorder %s35_s7, 2 }
  0x16   : > { %s175_s27 = sshll.u32 %s1738_s2, 4  ;;  %p51_p13 = scmp.ne.s32.totalorder %s1304_s17, %s1300_s16  ;;  %s176_s27 = int_to_ptr.hbm [resolvable:$true] %s175_s27 }
  0x17   : > { %1061 = dma.hbm_to_vmem [thread:$0]  (!%p1059_p10), %s176_s27, 256, %s178_s30, [#allocation10], %s1319_s5, %s1319_s5, %s1320_s6  }
  0x18   : > { %p52_p0 = scmp.eq.s32.totalorder %s1316_s20, 0  ;;  %s1754_s7 = smov (%p37_p12, %s35_s7), 0 }
  0x19   : > { %1740 = sst [smem:[#allocation17_spill]] %s1754_s7  ;;  %p1427_p5 = por %p151_p2, %p51_p13 }
  0x1a   : > { %p1421_p3 = por %p52_p0, %p51_p13  ;;  %s39_s11 = ssub.s32 %s1312_s19, %s1754_s7 }
  0x1b   : > { %p1074_p7 = scmp.lt.s32.totalorder %s1316_s20, 2  ;;  %p42_p9 = scmp.eq.s32.totalorder %s39_s11, 0 }
  0x1c   : > { %s194_s12 = sand.u32 1, %s1304_s17   ;;  %s986_s22 = sshll.u32 %s1312_s19, 5 }
  0x1d   : > { %s922_s13 = sshll.u32 %s194_s12, 5  ;;  %s1744_s0 = sld [smem:[#allocation19_spill]] }
  0x1e   : > { %s1436_s14 = scalar_select %p42_p9, %s1304_s17, %s44_s8  }
  0x1f   : > { %s198_s29 = scalar_lea.vmem [#allocation6], %s922_s13  ;;  %p1444_p2 = pnand %p1074_p7, %p1421_p3 }
  0x20   : > { %1743 = sst [smem:[#allocation18_spill]] %s1436_s14  ;;  %s207_s30 = sshll.u32 %s198_s29, 4  ;;  %s208_s30 = int_to_ptr.vmem [resolvable:$true] %s207_s30 }
  0x21   : > { %s217_s11 = sand.u32 1, %s1316_s20   ;;  %s195_s8 = scalar_lea.sflag [#allocation7], %s194_s12 }
  0x22   : > { %s1321_s2 = smov 64   ;;  %s1322_s7 = smov 4  }
  0x23   : > { %s204_s27 = scalar_lea.hbm %s1744_s0, %s986_s22  ;;  %s925_s25 = sshll.u32 %s194_s12, 6 }
  0x24   : > { %s205_s5 = sshll.u32 %s204_s27, 4  ;;  %s987_s22 = sshll.u32 %s1312_s19, 6  ;;  %s206_s5 = int_to_ptr.hbm [resolvable:$true] %s205_s5 }
  0x25   : > { %1065 = dma.hbm_to_vmem [thread:$0]  (!%p1444_p2), %s206_s5, 512, %s208_s30, %s195_s8, %s1321_s2, %s1321_s2, %s1322_s7  }
  0x26   : > { %s228_s27 = scalar_lea.hbm %s1729_s1, %s987_s22  ;;  %s221_s29 = scalar_lea.vmem [#allocation9], %s925_s25 }
  0x27   : > { %s231_s9 = sshll.u32 %s221_s29, 4  ;;  %s229_s0 = sshll.u32 %s228_s27, 4  ;;  %s232_s9 = int_to_ptr.vmem [resolvable:$true] %s231_s9  ;;  %s230_s0 = int_to_ptr.hbm [resolvable:$true] %s229_s0 }
  0x28   : > { %s218_s14 = scalar_lea.sflag [#allocation10], %s217_s11  ;;  %243 = sbr.rel (%p1405_p8) target bundleno = 263 (0x107), region = 36 }
  0x29   : > { %1068 = dma.hbm_to_vmem [thread:$0]  (!%p1444_p2), %s230_s0, 1024, %s232_s9, %s218_s14, %s1321_s2, %s1321_s2, %s1322_s7  }
  0x2a   : > { %s1460_s30 = sand.u32 (!%p1405_p8), 1, %s1300_s16  }
  0x2b   : > { %s929_s12 = sshll.u32 (!%p1405_p8), %s1460_s30, 5  ;;  %s246_s5 = scalar_lea.sflag (!%p1405_p8), [#allocation7], %s1460_s30 }
  0x2c   : > { %s1464_s8 = scalar_lea.vmem (!%p1405_p8), [#allocation6], %s929_s12 }
  0x2d   : > { %1279 = dma.done.wait (%p1392_p4), %s246_s5, 512  }
  0x2e   : > { %1281 = vsyncadd (%p1392_p4), %s246_s5, 4294966784  ;;  %s255_s0 = sand.u32 1, %s1383_s21   ;;  %s930_s2 = sshll.u32 %s1460_s30, 6 }
  0x2f   : > { %s256_s28 = scalar_lea.sflag [#allocation10], %s255_s0  ;;  %s1474_s7 = scalar_lea.vmem [#allocation9], %s930_s2 }
  0x30   : > { %1283 = dma.done.wait (%p1392_p4), %s256_s28, 1024  }
  0x31   : > { %1285 = vsyncadd (%p1392_p4), %s256_s28, 4294966272 }
  0x32   : > { %1287 = dma.done.wait (%p58_p1), [#allocation10], 256  }
  0x33   : > { %1289 = vsyncadd (%p58_p1), [#allocation10], 4294967040  ;;  %v999_v0 = vld [vmem:[%s1474_s7 + $0x38] sm:$0xff]  ;;  %v998_v1 = vld [vmem:[%s1474_s7 + $0x30] sm:$0xff]  ;;  %v1323_v12 = vmov 0.0   ;;  %s1664_s14 = scalar_lea.vmem [#allocation12], %s930_s2 }
  0x34   : > { %393 = vmatpush.bf16.msra.mxu0 %v999_v0  ;;  %1024 = vmatpush.bf16.msra.mxu1 %v999_v0  ;;  %v997_v2 = vld [vmem:[%s1474_s7 + $0x28] sm:$0xff]  ;;  %v996_v3 = vld [vmem:[%s1474_s7 + $0x20] sm:$0xff]  ;;  %v995_v4 = vld [vmem:[%s1474_s7 + $0x18] sm:$0xff]  ;;  %492 = vst [vmem:[#allocation3 + $0x8] sm:$0x1] %v1323_v12  ;;  %s1000_s6 = sshll.u32 %s1308_s18, 6 }
  0x35   : > { %1025 = vmatpush.bf16.msra.mxu2 %v999_v0  ;;  %1026 = vmatpush.bf16.msra.mxu3 %v999_v0  ;;  %v994_v5 = vld [vmem:[%s1474_s7 + $0x10] sm:$0xff]  ;;  %v993_v6 = vld [vmem:[%s1474_s7 + $0x8] sm:$0xff]  ;;  %v992_v7 = vld [vmem:[%s1474_s7] sm:$0xff]  ;;  %509 = vst [vmem:[#allocation5 + $0xf] sm:$0x1] %v1323_v12  ;;  %s795_s25 = scalar_lea.hbm %s1732_s4, %s1000_s6  ;;  %s796_s22 = sshll.u32 %s1664_s14, 4  ;;  %s797_s22 = int_to_ptr.vmem [resolvable:$true] %s796_s22 }
  0x36   : > { %v988_v8 = vld [vmem:[%s1464_s8] sm:$0xff]  ;;  %v989_v9 = vld [vmem:[%s1464_s8 + $0x8] sm:$0xff]  ;;  %v990_v10 = vld [vmem:[%s1464_s8 + $0x10] sm:$0xff]  ;;  %493 = vst [vmem:[#allocation3 + $0x10] sm:$0x1] %v1323_v12  ;;  %s798_s13 = sshll.u32 %s795_s25, 4  ;;  %s799_s13 = int_to_ptr.hbm [resolvable:$true] %s798_s13 }
  0x37   : > { %v991_v11 = vld [vmem:[%s1464_s8 + $0x18] sm:$0xff]  ;;  %494 = vst [vmem:[#allocation3 + $0x18] sm:$0x1] %v1323_v12  ;;  %v525_v13 = vld [vmem:[#allocation11] sm:$0xff]  ;;  %v1541_v49 = vld [vmem:[#allocation11 + $0x8] ss:$0 sm:$0xff] }
  0x38   : > { %394 = vmatpush.bf16.msra.mxu0 %v998_v1  ;;  %1027 = vmatpush.bf16.msra.mxu1 %v998_v1  ;;  %495 = vst [vmem:[#allocation3 + $0x20] sm:$0x1] %v1323_v12  ;;  %v1496_v14 = vperm.slane %v525_v13, 0  ;;  %v1498_v15 = vperm.slane %v525_v13, 1  ;;  %v1502_v18 = vperm.slane %v525_v13, 2  ;;  %v1505_v23 = vperm.slane %v525_v13, 4 }
  0x39   : > { %1028 = vmatpush.bf16.msra.mxu2 %v998_v1  ;;  %1029 = vmatpush.bf16.msra.mxu3 %v998_v1  ;;  %496 = vst [vmem:[#allocation3 + $0x28] sm:$0x1] %v1323_v12  ;;  %v1507_v24 = vperm.slane %v525_v13, 7  ;;  %v1509_v25 = vperm.slane %v525_v13, 3  ;;  %v1513_v29 = vperm.slane %v525_v13, 5  ;;  %v1515_v32 = vperm.slane %v525_v13, 6 }
  0x3a   : > { %497 = vst [vmem:[#allocation3 + $0x30] sm:$0x1] %v1323_v12  ;;  %v537_v16 = vmul.f32 0.0, %v1496_v14  ;;  %v554_v17 = vmul.f32 0.0, %v1498_v15  ;;  %v579_v22 = vmul.f32 0.0, %v1502_v18  ;;  %s784_s26 = scalar_lea.sflag [#allocation8], %s1460_s30 }
  0x3b   : > { %498 = vst [vmem:[#allocation3 + $0x38] sm:$0x1] %v1323_v12  ;;  %s1240_s27 = sshra.s32 %s799_s13, 4  ;;  %s1246_s5 = scalar_lea.hbm %s1732_s4, 128  ;;  %s1241_s27 = int_to_ptr.hbm [resolvable:$true] %s1240_s27 }
  0x3c   : > { %395 = vmatpush.bf16.msra.mxu0 %v997_v2  ;;  %1030 = vmatpush.bf16.msra.mxu1 %v997_v2  ;;  %499 = vst [vmem:[#allocation3 + $0x40] sm:$0x1] %v1323_v12  ;;  %v562_v21 = vadd.f32 %v554_v17, %v537_v16  ;;  %s1242_s29 = scalar_lea.hbm %s1241_s27, 64  ;;  %p1247_p10 = scmp.lt.s32.totalorder %s1241_s27, %s1732_s4 }
  0x3d   : > { %1031 = vmatpush.bf16.msra.mxu2 %v997_v2  ;;  %1032 = vmatpush.bf16.msra.mxu3 %v997_v2  ;;  %510 = vst [vmem:[#allocation5 + $0x17] sm:$0x1] %v1323_v12  ;;  %p1243_p1 = scmp.ne.s32.totalorder %s1241_s27, %s1242_s29  ;;  %p1248_p12 = scmp.lt.s32.totalorder %s1246_s5, %s1242_s29 }
  0x3e   : > { %511 = vst [vmem:[#allocation5 + $0x1f] sm:$0x1] %v1323_v12  ;;  %v587_v26 = vadd.f32 %v579_v22, %v562_v21 }
  0x3f   : > { %512 = vst [vmem:[#allocation5 + $0x27] sm:$0x1] %v1323_v12  ;;  %p1244_p4 = pnand %p1243_p1, %p1427_p5  ;;  %p1249_p13 = por %p1248_p12, %p1247_p10 }
  0x40   : > { %396 = vmatpush.bf16.msra.mxu0 %v996_v3  ;;  %1033 = vmatpush.bf16.msra.mxu1 %v996_v3  ;;  %513 = vst [vmem:[#allocation5 + $0x2f] sm:$0x1] %v1323_v12 }
  0x41   : > { %1034 = vmatpush.bf16.msra.mxu2 %v996_v3  ;;  %1035 = vmatpush.bf16.msra.mxu3 %v996_v3  ;;  %514 = vst [vmem:[#allocation5 + $0x37] sm:$0x1] %v1323_v12  ;;  %p1245_p8 = pneg %p1244_p4 }
  0x42   : > { %515 = vst [vmem:[#allocation5 + $0x3f] sm:$0x1] %v1323_v12 }
  0x43   : > { %516 = vst [vmem:[#allocation5 + $0x47] sm:$0x1] %v1323_v12  ;;  %p1250_p0 = pnand %p1249_p13, %p1245_p8 }
  0x44   : > { %397 = vmatpush.bf16.msra.mxu0 %v995_v4  ;;  %1036 = vmatpush.bf16.msra.mxu1 %v995_v4 }
  0x45   : > { %1037 = vmatpush.bf16.msra.mxu2 %v995_v4  ;;  %1038 = vmatpush.bf16.msra.mxu3 %v995_v4 }
  0x48   : > { %398 = vmatpush.bf16.msra.mxu0 %v994_v5  ;;  %1039 = vmatpush.bf16.msra.mxu1 %v994_v5 }
  0x49   : > { %1040 = vmatpush.bf16.msra.mxu2 %v994_v5  ;;  %1041 = vmatpush.bf16.msra.mxu3 %v994_v5 }
  0x4c   : > { %399 = vmatpush.bf16.msra.mxu0 %v993_v6  ;;  %1042 = vmatpush.bf16.msra.mxu1 %v993_v6 }
  0x4d   : > { %1043 = vmatpush.bf16.msra.mxu2 %v993_v6  ;;  %1044 = vmatpush.bf16.msra.mxu3 %v993_v6 }
  0x50   : > { %400 = vmatpush.bf16.msra.mxu0 %v992_v7  ;;  %1045 = vmatpush.bf16.msra.mxu1 %v992_v7 }
  0x51   : > { %1046 = vmatpush.bf16.msra.mxu2 %v992_v7  ;;  %1047 = vmatpush.bf16.msra.mxu3 %v992_v7 }
  0x53   : > { %401 = vmatmul.bf16.vlgmr.msra.gmra.mxu0 %v988_v8  ;;  %406 = vmatmul.bf16.vlgmr.msra.gmra.mxu1 %v989_v9 }
  0x54   : > { %411 = vmatmul.bf16.vlgmr.msra.gmra.mxu2 %v990_v10  ;;  %416 = vmatmul.bf16.vlgmr.msra.gmra.mxu3 %v991_v11  ;;  %v1573_v10 = vmul.f32 0.0, %v1515_v32 }
  0xd0   : > { %v402_v19 = vpop.f32.mrf.mxu0  ;;  %v407_v20 = vpop.f32.mrf.mxu1 }
  0xd1   : > { %500 = vst [vmem:[#allocation3 + $0x9] sm:$0x7f] %v402_v19  ;;  %v555_v27 = vmul.f32 %v1498_v15, %v402_v19  ;;  %v629_v28 = vmul.f32 %v1505_v23, %v402_v19  ;;  %v557_v34 = vmul.f32 %v1498_v15, %v407_v20  ;;  %v1519_v35 = vmul.f32 %v1505_v23, %v407_v20 }
  0xd2   : > { %517 = vst [vmem:[#allocation5 + $0x7] sm:$0xfe] %v402_v19  ;;  %v1522_v36 = vmul.f32 %v1507_v24, %v407_v20 }
  0xd3   : > { %502 = vst [vmem:[#allocation3 + $0x19] sm:$0x7f] %v407_v20 }
  0xd4   : > { %519 = vst [vmem:[#allocation5 + $0x17] sm:$0xfe] %v407_v20 }
  0xd7   : > { %v412_v30 = vpop.f32.mrf.mxu2  ;;  %v417_v31 = vpop.f32.mrf.mxu3 }
  0xd8   : > { %v529_v33 = vld [vmem:[#allocation3 + $0x8] sm:$0xff]  ;;  %504 = vst [vmem:[#allocation3 + $0x29] sm:$0x7f] %v412_v30  ;;  %v559_v37 = vmul.f32 %v1498_v15, %v412_v30  ;;  %v1528_v41 = vmul.f32 %v1505_v23, %v412_v30  ;;  %v1531_v42 = vmul.f32 %v1507_v24, %v412_v30  ;;  %v404_v43 = vpop.f32.mrf.mxu0  ;;  %v561_v46 = vmul.f32 %v1498_v15, %v417_v31  ;;  %v409_v55 = vpop.f32.mrf.mxu1 }
  0xd9   : > { %v538_v38 = vmul.f32 %v1496_v14, %v529_v33  ;;  %v571_v39 = vld [vmem:[#allocation5 + $0x8] sm:$0xff]  ;;  %v604_v40 = vmul.f32 %v1509_v25, %v529_v33  ;;  %521 = vst [vmem:[#allocation5 + $0x27] sm:$0xfe] %v412_v30  ;;  %v1536_v47 = vmul.f32 %v1505_v23, %v417_v31  ;;  %v1539_v48 = vmul.f32 %v1507_v24, %v417_v31 }
  0xda   : > { %v580_v44 = vmul.f32 %v1502_v18, %v571_v39  ;;  %v531_v45 = vld [vmem:[#allocation3 + $0x18] sm:$0xff]  ;;  %506 = vst [vmem:[#allocation3 + $0x39] sm:$0x7f] %v417_v31  ;;  %v654_v52 = vmul.f32 %v1513_v29, %v571_v39  ;;  %v556_v56 = vmul.f32 %v1498_v15, %v404_v43  ;;  %v1550_v58 = vmul.f32 %v1505_v23, %v404_v43 }
  0xdb   : > { %v563_v50 = vadd.f32 %v555_v27, %v538_v38  ;;  %v612_v51 = vadd.f32 %v604_v40, %v587_v26  ;;  %v540_v53 = vmul.f32 %v1496_v14, %v531_v45  ;;  %523 = vst [vmem:[#allocation5 + $0x37] sm:$0xfe] %v417_v31  ;;  %v724_v54 = vld [vmem:[#allocation5 + $0x18] sm:$0xff]  ;;  %v1547_v57 = vmul.f32 %v1509_v25, %v531_v45 }
  0xdc   : > { %501 = vst [vmem:[#allocation3 + $0x11] sm:$0x7f] %v404_v43  ;;  %v1553_v59 = vmul.f32 %v1515_v32, %v531_v45  ;;  %v706_v62 = vmul.f32 %v1507_v24, %v404_v43  ;;  %v582_v63 = vmul.f32 %v724_v54, %v1502_v18  ;;  %v1558_v1 = vmul.f32 %v1541_v49, %v724_v54 }
  0xdd   : > { %v637_v60 = vadd.f32 %v629_v28, %v612_v51  ;;  %v565_v61 = vadd.f32 %v557_v34, %v540_v53  ;;  %518 = vst [vmem:[#allocation5 + $0xf] sm:$0xfe] %v404_v43  ;;  %v588_v0 = vadd.f32 %v580_v44, %v563_v50  ;;  %v558_v2 = vmul.f32 %v1498_v15, %v409_v55 }
  0xde   : > { %503 = vst [vmem:[#allocation3 + $0x21] sm:$0x7f] %v409_v55  ;;  %v1562_v3 = vmul.f32 %v1505_v23, %v409_v55  ;;  %v1565_v6 = vmul.f32 %v724_v54, %v1513_v29  ;;  %v1568_v7 = vmul.f32 %v1507_v24, %v409_v55 }
  0xdf   : > { %v662_v4 = vadd.f32 %v654_v52, %v637_v60  ;;  %v533_v5 = vld [vmem:[#allocation3 + $0x28] sm:$0xff]  ;;  %520 = vst [vmem:[#allocation5 + $0x1f] sm:$0xfe] %v409_v55  ;;  %v414_v8 = vpop.f32.mrf.mxu2  ;;  %v1570_v9 = vpop.f32.mrf.mxu3  ;;  %v590_v12 = vadd.f32 %v582_v63, %v565_v61 }
  0xe0   : > { %v542_v11 = vmul.f32 %v1496_v14, %v533_v5  ;;  %v608_v13 = vmul.f32 %v1509_v25, %v533_v5  ;;  %v1578_v16 = vmul.f32 %v1515_v32, %v533_v5  ;;  %v726_v17 = vld [vmem:[#allocation5 + $0x28] sm:$0xff]  ;;  %505 = vst [vmem:[#allocation3 + $0x31] sm:$0x7f] %v414_v8  ;;  %v560_v21 = vmul.f32 %v1498_v15, %v414_v8 }
  0xe1   : > { %v535_v19 = vld [vmem:[#allocation3 + $0x38] sm:$0xff]  ;;  %v1581_v20 = vmul.f32 %v1541_v49, %v726_v17  ;;  %522 = vst [vmem:[#allocation5 + $0x2f] sm:$0xfe] %v414_v8  ;;  %v584_v22 = vmul.f32 %v726_v17, %v1502_v18  ;;  %v1586_v26 = vmul.f32 %v1505_v23, %v414_v8  ;;  %v1591_v31 = vmul.f32 %v726_v17, %v1513_v29 }
  0xe2   : > { %v567_v27 = vadd.f32 %v559_v37, %v542_v11  ;;  %v544_v28 = vmul.f32 %v1496_v14, %v535_v19  ;;  %v610_v30 = vmul.f32 %v1509_v25, %v535_v19  ;;  %v1593_v33 = vld [vmem:[#allocation5 + $0x38] sm:$0xff]  ;;  %507 = vst [vmem:[#allocation3 + $0x41] sm:$0x7f] %v1570_v9  ;;  %v1597_v15 = vmul.f32 %v1515_v32, %v535_v19 }
  0xe3   : > { %v530_v34 = vld [vmem:[#allocation3 + $0x10] sm:$0xff]  ;;  %v1600_v38 = vmul.f32 %v1507_v24, %v414_v8  ;;  %524 = vst [vmem:[#allocation5 + $0x3f] sm:$0xfe] %v1570_v9  ;;  %v586_v37 = vmul.f32 %v1593_v33, %v1502_v18  ;;  %v1607_v39 = vmul.f32 %v1505_v23, %v1570_v9 }
  0xe4   : > { %v569_v40 = vadd.f32 %v561_v46, %v544_v28  ;;  %v539_v43 = vmul.f32 %v1496_v14, %v530_v34  ;;  %v572_v44 = vld [vmem:[#allocation5 + $0x10] sm:$0xff]  ;;  %v605_v45 = vmul.f32 %v1509_v25, %v530_v34  ;;  %v680_v50 = vmul.f32 %v1515_v32, %v530_v34 }
  0xe5   : > { %v581_v51 = vmul.f32 %v1502_v18, %v572_v44  ;;  %v655_v52 = vmul.f32 %v1513_v29, %v572_v44  ;;  %v732_v53 = vmul.f32 %v1541_v49, %v572_v44  ;;  %v532_v54 = vld [vmem:[#allocation3 + $0x20] sm:$0xff]  ;;  %v592_v55 = vadd.f32 %v584_v22, %v567_v27 }
  0xe6   : > { %v564_v60 = vadd.f32 %v556_v56, %v539_v43  ;;  %v613_v61 = vadd.f32 %v605_v45, %v588_v0  ;;  %v688_v23 = vadd.f32 %v680_v50, %v662_v4  ;;  %v541_v46 = vmul.f32 %v1496_v14, %v532_v54  ;;  %v574_v63 = vld [vmem:[#allocation5 + $0x20] sm:$0xff]  ;;  %v1624_v56 = vld [vmem:[%s1731_s3] ss:$0 sm:$0xff] }
  0xe7   : > { %v583_v5 = vmul.f32 %v1502_v18, %v574_v63  ;;  %v607_v8 = vmul.f32 %v1509_v25, %v532_v54  ;;  %v657_v11 = vmul.f32 %v1513_v29, %v574_v63  ;;  %v682_v17 = vmul.f32 %v1515_v32, %v532_v54  ;;  %v534_v19 = vld [vmem:[#allocation3 + $0x30] sm:$0xff] }
  0xe8   : > { %v589_v28 = vadd.f32 %v581_v51, %v564_v60  ;;  %v638_v34 = vadd.f32 %v1550_v58, %v613_v61  ;;  %v714_v44 = vadd.f32 %v706_v62, %v688_v23  ;;  %v566_v0 = vadd.f32 %v558_v2, %v541_v46  ;;  %v576_v4 = vld [vmem:[#allocation5 + $0x30] sm:$0xff] }
  0xe9   : > { %v615_v22 = vadd.f32 %v607_v8, %v590_v12  ;;  %v734_v27 = vmul.f32 %v1541_v49, %v574_v63  ;;  %v543_v43 = vmul.f32 %v1496_v14, %v534_v19  ;;  %v585_v45 = vmul.f32 %v1502_v18, %v576_v4 }
  0xea   : > { %v614_v50 = vadd.f32 %v1547_v57, %v589_v28  ;;  %v663_v51 = vadd.f32 %v655_v52, %v638_v34  ;;  %v740_v54 = vadd.f32 %v732_v53, %v714_v44  ;;  %v591_v58 = vadd.f32 %v583_v5, %v566_v0  ;;  %v602_v53 = vld [vmem:[#allocation3 + $0x40] sm:$0xff] }
  0xeb   : > { %v640_v62 = vadd.f32 %v1562_v3, %v615_v22  ;;  %v568_v60 = vadd.f32 %v560_v21, %v543_v43  ;;  %v609_v61 = vmul.f32 %v1509_v25, %v534_v19  ;;  %v659_v2 = vmul.f32 %v1513_v29, %v576_v4 }
  0xec   : > { %v689_v12 = vadd.f32 %v1553_v59, %v663_v51  ;;  %v751_v23 = vadd.f32 %v1624_v56, %v740_v54  ;;  %v616_v46 = vadd.f32 %v608_v13, %v591_v58  ;;  %v639_v14 = vadd.f32 %v1519_v35, %v614_v50 }
  0xed   : > { %v665_v18 = vadd.f32 %v657_v11, %v640_v62  ;;  %v593_v63 = vadd.f32 %v585_v45, %v568_v60  ;;  %v617_v57 = vadd.f32 %v609_v61, %v592_v55  ;;  %v684_v52 = vmul.f32 %v1515_v32, %v534_v19 }
  0xee   : > { %v715_v3 = vadd.f32 %v1522_v36, %v689_v12  ;;  %v664_v21 = vadd.f32 %v1565_v6, %v639_v14  ;;  %v641_v5 = vadd.f32 %v1528_v41, %v616_v46  ;;  %v736_v8 = vmul.f32 %v1541_v49, %v576_v4  ;;  %v652_v36 = vld [vmem:[#allocation5 + $0x40] sm:$0xff] }
  0xef   : > { %v691_v59 = vadd.f32 %v1578_v16, %v665_v18  ;;  %v618_v28 = vadd.f32 %v610_v30, %v593_v63  ;;  %v642_v13 = vadd.f32 %v1586_v26, %v617_v57  ;;  %v594_v35 = vadd.f32 %v586_v37, %v569_v40 }
  0xf0   : > { %v741_v11 = vadd.f32 %v1558_v1, %v715_v3  ;;  %v690_v55 = vadd.f32 %v682_v17, %v664_v21  ;;  %v666_v19 = vadd.f32 %v1591_v31, %v641_v5  ;;  %v611_v34 = vmul.f32 %v1509_v25, %v602_v53 }
  0xf1   : > { %v717_v6 = vadd.f32 %v1531_v42, %v691_v59  ;;  %v667_v44 = vadd.f32 %v659_v2, %v642_v13  ;;  %v643_v41 = vadd.f32 %v1536_v47, %v618_v28  ;;  %v660_v16 = vmul.f32 %v1593_v33, %v1513_v29 }
  0xf2   : > { %v752_v30 = vadd.f32 %v1624_v56, %v741_v11  ;;  %v716_v26 = vadd.f32 %v1568_v7, %v690_v55  ;;  %v692_v1 = vadd.f32 %v684_v52, %v666_v19  ;;  %v619_v37 = vadd.f32 %v611_v34, %v594_v35 }
  0xf3   : > { %v743_v31 = vadd.f32 %v1581_v20, %v717_v6  ;;  %v693_v25 = vadd.f32 %v1597_v15, %v667_v44  ;;  %v661_v40 = vmul.f32 %v1513_v29, %v652_v36  ;;  %v668_v42 = vadd.f32 %v660_v16, %v643_v41 }
  0xf4   : > { %v1004_v17 = vpack.c.bf16 %v752_v30, %v751_v23  ;;  %v742_v47 = vadd.f32 %v734_v27, %v716_v26  ;;  %v718_v0 = vadd.f32 %v1600_v38, %v692_v1  ;;  %v644_v4 = vadd.f32 %v1607_v39, %v619_v37 }
  0xf5   : > { %v719_v22 = vadd.f32 %v1539_v48, %v693_v25  ;;  %v737_v7 = vmul.f32 %v1541_v49, %v1593_v33  ;;  %v686_v43 = vmul.f32 %v1515_v32, %v602_v53  ;;  %v713_v20 = vmul.f32 0.0, %v1507_v24 }
  0xf6   : > { %1005 = vst [vmem:[%s1664_s14] sm:$0xff] %v1004_v17   ;;  %v753_v29 = vadd.f32 %v1624_v56, %v742_v47  ;;  %v754_v15 = vadd.f32 %v1624_v56, %v743_v31  ;;  %v744_v38 = vadd.f32 %v736_v8, %v718_v0  ;;  %v669_v48 = vadd.f32 %v661_v40, %v644_v4 }
  0xf7   : > { %v745_v33 = vadd.f32 %v737_v7, %v719_v22  ;;  %v694_v39 = vadd.f32 %v686_v43, %v668_v42  ;;  %v712_v32 = vmul.f32 %v1507_v24, %v1570_v9  ;;  %v739_v50 = vmul.f32 0.0, %v1541_v49 }
  0xf8   : > { %v1009_v27 = vpack.c.bf16 %v754_v15, %v753_v29  ;;  %v695_v45 = vadd.f32 %v1573_v10, %v669_v48  ;;  %v1324_v51 = vmov 0   ;;  %v755_v54 = vadd.f32 %v1624_v56, %v744_v38 }
  0xf9   : > { %775 = vst [vmem:[%s1664_s14 + $0x20] sm:$0xf] %v1324_v51  ;;  %v756_v58 = vadd.f32 %v1624_v56, %v745_v33  ;;  %v720_v62 = vadd.f32 %v712_v32, %v694_v39  ;;  %v738_v60 = vmul.f32 %v1541_v49, %v652_v36 }
  0xfa   : > { %776 = vst [vmem:[%s1664_s14 + $0x24] sm:$0xf] %v1324_v51  ;;  %v721_v24 = vadd.f32 %v713_v20, %v695_v45 }
  0xfb   : > { %1021 = vst [vmem:[%s1664_s14 + $0x8] sm:$0xff] %v1009_v27   ;;  %v1014_v9 = vpack.c.bf16 %v756_v58, %v755_v54  ;;  %v746_v10 = vadd.f32 %v738_v60, %v720_v62 }
  0xfc   : > { %777 = vst [vmem:[%s1664_s14 + $0x28] sm:$0xf] %v1324_v51  ;;  %v747_v61 = vadd.f32 %v739_v50, %v721_v24 }
  0xfd   : > { %778 = vst [vmem:[%s1664_s14 + $0x2c] sm:$0xf] %v1324_v51  ;;  %v757_v49 = vadd.f32 %v1624_v56, %v746_v10 }
  0xfe   : > { %1022 = vst [vmem:[%s1664_s14 + $0x10] sm:$0xff] %v1014_v9   ;;  %v758_v2 = vadd.f32 %v1624_v56, %v747_v61 }
  0xff   : > { %779 = vst [vmem:[%s1664_s14 + $0x30] sm:$0xf] %v1324_v51 }
 0x100   : > { %780 = vst [vmem:[%s1664_s14 + $0x34] sm:$0xf] %v1324_v51  ;;  %v1019_v12 = vpack.c.bf16 %v758_v2, %v757_v49 }
 0x101   : > { %781 = vst [vmem:[%s1664_s14 + $0x38] sm:$0xf] %v1324_v51 }
 0x102   : > { %782 = vst [vmem:[%s1664_s14 + $0x3c] sm:$0xf] %v1324_v51 }
 0x103   : > { %1023 = vst [vmem:[%s1664_s14 + $0x18] sm:$0xff] %v1019_v12  }
 0x104   : > { %1253 = shalt.err (!%p1250_p0)
}
 0x105   : > { %s1325_s30 = smov 64   ;;  %s1326_s2 = smov 4  }
 0x106   : > { %1056 = dma.vmem_to_hbm [thread:$0]  (%p1427_p5), %s797_s22, 1024, %s799_s13, %s784_s26, %s1325_s30, %s1325_s30, %s1326_s2  }
 0x107 PF: > { %s813_s28 = sand.u32 1, %s1296_s15   ;;  %p1070_p3 = pnand %p921_p11, %p1397_p6 }
 0x108   : > { %s814_s7 = scalar_lea.sflag [#allocation8], %s813_s28 }
 0x109   : > { %p1071_p7 = pneg %p1070_p3 }
 0x10b   : > { %1291 = dma.done.wait (%p1071_p7), %s814_s7, 1024  }
 0x10c   : > { %1293 = vsyncadd (%p1071_p7), %s814_s7, 4294966272  ;;  %s23_s20 = sadd.s32 1, %s1316_s20   ;;  %s1746_s21 = sld [smem:[#allocation18_spill]] }
 0x10d   : > { %p20_p9 = scmp.ge.s32.totalorder %s23_s20, 4   ;;  %s1747_s10 = sld [smem:[#allocation17_spill]] }
 0x10e   : > { %s1748_s15 = smov %s1300_s16  ;;  %s1749_s16 = smov %s1304_s17 }
 0x10f   : > { %s1751_s18 = smov %s1312_s19  ;;  %22 = sbr.rel (!%p20_p9) target bundleno = 11 (0xb), region = 119 }
 0x112   : > { %s1750_s17 = smov %s1746_s21 }
 0x113   : > { %s1752_s19 = smov %s1747_s10 }
 0x114   :  { %820 = vsyncpa [#allocation7], 1 }
 0x115   :  { %822 = vsyncpa [#allocation7 + $0x1], 1 }
 0x116   :  { %823 = vsyncpa [#allocation10], 1 }
 0x117   :  { %825 = vsyncpa [#allocation10 + $0x1], 1 }
 0x118   :  { %826 = vsyncpa [#allocation8], 1 }
 0x119   :  { %828 = vsyncpa [#allocation8 + $0x1], 1 }

</bundles_post_ra>
